<compile_context>
chip_gen: v7x
topology: tpu7x:2x2x1
jax: 0.10.0
libtpu: 0.0.40
codegen_flags: <defaults>
</compile_context>

<pallas_src>
import functools

import jax
import jax.numpy as jnp
import numpy as np
from jax.experimental import pallas as pl
from jax.experimental.pallas import tpu as pltpu

GEM_EPS = 1e-6  # default eps of the PyTorch GeM module


def _int_pow(x, n):
    """x**n for a static positive integer n via pow-by-squaring (VPU multiplies only)."""
    assert n >= 1
    result = None
    base = x
    while n > 0:
        if n & 1:
            result = base if result is None else result * base
        n >>= 1
        if n:
            base = base * base
    return result


def _gem_kernel(p_ref, x_ref, o_ref, acc_ref, *, eps, inv_hw, static_int_p):
    """One (batch, channel-tile, hw-tile) step of GeM pooling.

    p_ref   : (1,)          SMEM   learnable exponent p
    x_ref   : (1, tc, thw)  VMEM   input block in its HBM dtype (upcast here)
    o_ref   : (1, tc, 1)    VMEM   pooled output block
    acc_ref : (1, tc, 1)    VMEM   f32 running spatial sum (scratch)
    """
    k = pl.program_id(2)

    @pl.when(k == 0)
    def _():
        acc_ref[...] = jnp.zeros_like(acc_ref)

    x = x_ref[...].astype(jnp.float32)            # per-block upcast (keeps HBM bf16-narrow)
    xc = jnp.maximum(x, eps)                      # clamp(min=eps)              (VPU)
    if static_int_p is not None:
        xp = _int_pow(xc, static_int_p)           # x^p via repeated multiplies (VPU)
    else:
        p = p_ref[0]
        xp = jnp.exp(p * jnp.log(xc))             # x^p: 2 EUP pushes/element   (EUP)
    acc_ref[...] += jnp.sum(xp, axis=2, keepdims=True)   # spatial partial sum   (XLU)

    @pl.when(k == pl.num_programs(2) - 1)
    def _():
        mean = acc_ref[...] * inv_hw
        if static_int_p is not None:
            inv_p = 1.0 / static_int_p
        else:
            inv_p = 1.0 / p_ref[0]
        o_ref[...] = jnp.exp(jnp.log(mean) * inv_p).astype(o_ref.dtype)


def _choose_block(C, hw, itemsize, budget=2 * 1024 * 1024):
    """Pick (tc, thw) honoring the (8,128)-or-full-dim rule under a ~2 MiB VMEM budget."""
    if C * hw * itemsize <= budget:
        return C, hw
    # Prefer keeping channels whole and tiling the spatial (reduction) axis.
    thw_divs = [d for d in range(128, hw + 1, 128) if hw % d == 0]
    for thw in reversed(thw_divs):
        if C * thw * itemsize <= budget:
            return C, thw
    thw = thw_divs[0] if thw_divs else hw
    # Then tile channels with a multiple-of-8 divisor.
    tc_divs = [d for d in range(8, C + 1, 8) if C % d == 0]
    for tc in reversed(tc_divs):
        if tc * thw * itemsize <= budget:
            return tc, thw
    # Fallback: smallest legal tiles (pathological shapes may need a raised vmem limit).
    return (tc_divs[0] if tc_divs else C), thw


def _static_p_value(p):
    """float(p) if p is a compile-time constant, else None (e.g. traced under jit)."""
    try:
        return float(np.asarray(p).reshape(-1)[0])
    except Exception:
        return None


def gem_forward(x_nchw, p, eps=GEM_EPS):
    """GeM.forward: x (N, C, H, W), p scalar/(1,) -> (N, C, 1, 1) in x's dtype."""
    N, C, H, W = x_nchw.shape
    hw = H * W
    # Free, contiguous reshape: no transpose, no dtype cast in the wrapper.
    # TODO(synk): for small spatial maps (e.g. 7x7) the lane axis is under-utilized;
    #             packing several channels per 128-lane vreg would tighten VPU/EUP use.
    x3 = x_nchw.reshape(N, C, hw)
    p_arr = jnp.asarray(p, jnp.float32).reshape(1)

    p_static = _static_p_value(p)
    static_int_p = None
    if (p_static is not None and abs(p_static - round(p_static)) < 1e-6
            and 1 <= round(p_static) <= 16):
        static_int_p = int(round(p_static))

    tc, thw = _choose_block(C, hw, x3.dtype.itemsize)
    grid = (N, C // tc, hw // thw)

    elems = N * C * hw
    cost = pl.CostEstimate(
        flops=4 * elems,
        transcendentals=(2 * elems if static_int_p is None else 0) + 2 * N * C,
        bytes_accessed=elems * x3.dtype.itemsize + N * C * x3.dtype.itemsize + 4,
    )

    out = pl.pallas_call(
        functools.partial(_gem_kernel, eps=float(eps), inv_hw=1.0 / hw,
                          static_int_p=static_int_p),
        out_shape=jax.ShapeDtypeStruct((N, C, 1), x_nchw.dtype),
        grid=grid,
        in_specs=[
            pl.BlockSpec(memory_space=pltpu.MemorySpace.SMEM),      # p (scalar)
            pl.BlockSpec((1, tc, thw), lambda n, c, k: (n, c, k)),  # input block
        ],
        out_specs=pl.BlockSpec((1, tc, 1), lambda n, c, k: (n, c, 0)),
        scratch_shapes=[pltpu.VMEM((1, tc, 1), jnp.float32)],
        compiler_params=pltpu.CompilerParams(
            dimension_semantics=("parallel", "parallel", "arbitrary")),
        cost_estimate=cost,
    )(p_arr, x3)
    return out.reshape(N, C, 1, 1)


def _ref_gem(x_nchw, p, eps):
    """Pure-JAX (f32) reference of GeM for correctness checks."""
    xc = jnp.maximum(x_nchw.astype(jnp.float32), eps)
    pooled = jnp.mean(xc ** p, axis=(2, 3), keepdims=True)
    return pooled ** (1.0 / p)


if __name__ == "__main__":
    key = jax.random.PRNGKey(0)
    kx, _ = jax.random.split(key)

    batch, channels, H, W = 2, 4, 16, 16
    x = jax.random.normal(kx, (batch, channels, H, W), jnp.float32)

    # 1) Default GeM init p=3 -> static-integer specialization (VPU pow, no EUP).
    p3 = jnp.ones((1,), jnp.float32) * 3.0
    out3 = jax.block_until_ready(gem_forward(x, p3))
    assert out3.shape == (batch, channels, 1, 1)
    np.testing.assert_allclose(np.asarray(out3),
                               np.asarray(_ref_gem(x, 3.0, GEM_EPS)),
                               rtol=1e-4, atol=1e-5)

    # 2) Non-integer p -> general exp(p*log(x)) path (same path as a traced/learnable p).
    p25 = jnp.ones((1,), jnp.float32) * 2.5
    out25 = jax.block_until_ready(gem_forward(x, p25))
    np.testing.assert_allclose(np.asarray(out25),
                               np.asarray(_ref_gem(x, 2.5, GEM_EPS)),
                               rtol=1e-4, atol=1e-5)

    # 3) bf16 HBM-resident activations: DMA'd narrow, upcast in-kernel, bf16 output.
    x_bf16 = x.astype(jnp.bfloat16)
    out_bf = jax.block_until_ready(gem_forward(x_bf16, p3))
    np.testing.assert_allclose(np.asarray(out_bf.astype(jnp.float32)),
                               np.asarray(_ref_gem(x_bf16, 3.0, GEM_EPS)),
                               rtol=2e-2, atol=2e-2)

    print("KERNEL_OK")
</pallas_src>

<mosaic_0001>
module attributes {stable_mosaic.version = 11 : i64} {
  func.func @_gem_kernel(%arg0: i32, %arg1: i32, %arg2: i32, %arg3: memref<1xf32, #tpu.memory_space<smem>>, %arg4: memref<1x4x256xf32, #tpu.memory_space<vmem>>, %arg5: memref<1x4x1xf32, #tpu.memory_space<vmem>>, %arg6: memref<1x4x1xf32, #tpu.memory_space<vmem>>) attributes {dimension_semantics = [#tpu.dimension_semantics<parallel>, #tpu.dimension_semantics<parallel>, #tpu.dimension_semantics<arbitrary>], iteration_bounds = array<i64: 2, 1, 1>, scalar_prefetch = 0 : i64, scratch_operands = 1 : i64, tpu.core_type = #tpu.core_type<tc>, window_params = [{transform_indices = @transform_0, window_bounds = array<i64: 1>}, {transform_indices = @transform_1, window_bounds = array<i64: 1, 4, 256>}, {transform_indices = @transform_2, window_bounds = array<i64: 1, 4, 1>}]} {
    %c0_i32 = arith.constant 0 : i32
    %0 = arith.cmpi eq, %arg2, %c0_i32 : i32
    %1 = arith.extui %0 : i1 to i32
    %c0_i32_0 = arith.constant 0 : i32
    %2 = arith.cmpi ne, %1, %c0_i32_0 : i32
    scf.if %2 {
      %cst_12 = arith.constant 0.000000e+00 : f32
      %16 = vector.broadcast %cst_12 : f32 to vector<1x4x1xf32>
      %c0_13 = arith.constant 0 : index
      %c0_14 = arith.constant 0 : index
      %c0_15 = arith.constant 0 : index
      %17 = vector.load %arg6[%c0_13, %c0_14, %c0_15] : memref<1x4x1xf32, #tpu.memory_space<vmem>>, vector<1x4x1xf32>
      tpu.vector_store %arg6[%c0_13, %c0_14, %c0_15], %16 {strides = array<i32>} : memref<1x4x1xf32, #tpu.memory_space<vmem>>, vector<1x4x1xf32>,
    } else {
    }
    %c0 = arith.constant 0 : index
    %c0_1 = arith.constant 0 : index
    %c0_2 = arith.constant 0 : index
    %3 = vector.load %arg4[%c0, %c0_1, %c0_2] : memref<1x4x256xf32, #tpu.memory_space<vmem>>, vector<1x4x256xf32>
    %cst = arith.constant 9.99999997E-7 : f32
    %4 = vector.broadcast %cst : f32 to vector<1x4x256xf32>
    %5 = arith.maximumf %3, %4 : vector<1x4x256xf32>
    %6 = arith.mulf %5, %5 : vector<1x4x256xf32>
    %7 = arith.mulf %5, %6 : vector<1x4x256xf32>
    %c0_3 = arith.constant 0 : index
    %c0_4 = arith.constant 0 : index
    %c0_5 = arith.constant 0 : index
    %8 = vector.load %arg6[%c0_3, %c0_4, %c0_5] : memref<1x4x1xf32, #tpu.memory_space<vmem>>, vector<1x4x1xf32>
    %cst_6 = arith.constant dense<0.000000e+00> : vector<1x4xf32>
    %9 = vector.multi_reduction <add>, %7, %cst_6 [2] : vector<1x4x256xf32> to vector<1x4xf32>
    %10 = vector.shape_cast %9 : vector<1x4xf32> to vector<1x4x1xf32>
    %11 = arith.addf %8, %10 : vector<1x4x1xf32>
    %c0_7 = arith.constant 0 : index
    %c0_8 = arith.constant 0 : index
    %c0_9 = arith.constant 0 : index
    %12 = vector.load %arg6[%c0_7, %c0_8, %c0_9] : memref<1x4x1xf32, #tpu.memory_space<vmem>>, vector<1x4x1xf32>
    tpu.vector_store %arg6[%c0_7, %c0_8, %c0_9], %11 {strides = array<i32>} : memref<1x4x1xf32, #tpu.memory_space<vmem>>, vector<1x4x1xf32>,
    %c0_i32_10 = arith.constant 0 : i32
    %13 = arith.cmpi eq, %arg2, %c0_i32_10 : i32
    %14 = arith.extui %13 : i1 to i32
    %c0_i32_11 = arith.constant 0 : i32
    %15 = arith.cmpi ne, %14, %c0_i32_11 : i32
    scf.if %15 {
      %c0_12 = arith.constant 0 : index
      %c0_13 = arith.constant 0 : index
      %c0_14 = arith.constant 0 : index
      %16 = vector.load %arg6[%c0_12, %c0_13, %c0_14] : memref<1x4x1xf32, #tpu.memory_space<vmem>>, vector<1x4x1xf32>
      %cst_15 = arith.constant 3.906250e-03 : f32
      %17 = vector.broadcast %cst_15 : f32 to vector<1x4x1xf32>
      %18 = arith.mulf %16, %17 : vector<1x4x1xf32>
      %19 = math.log %18 : vector<1x4x1xf32>
      %cst_16 = arith.constant 0.333333343 : f32
      %20 = vector.broadcast %cst_16 : f32 to vector<1x4x1xf32>
      %21 = arith.mulf %19, %20 : vector<1x4x1xf32>
      %22 = math.exp %21 : vector<1x4x1xf32>
      %c0_17 = arith.constant 0 : index
      %c0_18 = arith.constant 0 : index
      %c0_19 = arith.constant 0 : index
      %23 = vector.load %arg5[%c0_17, %c0_18, %c0_19] : memref<1x4x1xf32, #tpu.memory_space<vmem>>, vector<1x4x1xf32>
      tpu.vector_store %arg5[%c0_17, %c0_18, %c0_19], %22 {strides = array<i32>} : memref<1x4x1xf32, #tpu.memory_space<vmem>>, vector<1x4x1xf32>,
    } else {
    }
    return
  }
  func.func @transform_0(%arg0: i32, %arg1: i32, %arg2: i32) -> i32 {
    %c0_i32 = arith.constant 0 : i32
    %c0_i32_0 = arith.constant 0 : i32
    return %c0_i32 : i32
  }
  func.func @transform_1(%arg0: i32, %arg1: i32, %arg2: i32) -> (i32, i32, i32) {
    %c0_i32 = arith.constant 0 : i32
    return %arg0, %arg1, %arg2 : i32, i32, i32
  }
  func.func @transform_2(%arg0: i32, %arg1: i32, %arg2: i32) -> (i32, i32, i32) {
    %c0_i32 = arith.constant 0 : i32
    %c0_i32_0 = arith.constant 0 : i32
    return %arg0, %arg1, %c0_i32 : i32, i32, i32
  }
}

</mosaic_0001>

<bundles_post_ra>
// kernel: tpu_custom_call.1
= control target key start
LH: loop header
LB: loop body
LE: loop exit
PB: predicated region body
PF: predicated region fallthrough
CT: control target
= control target key end

     0   :  { %8 = vsyncpa [#allocation5], 0  ;;  %s622_s0 = inlined_call_operand.<no memory space> [shape: f32[1], index: 0, kind: input, shape index: {}]   ;;  %s623_s1 = inlined_call_operand.hbm [shape: f32[2,4,256], index: 1, kind: input, shape index: {}]   ;;  %s624_s2 = inlined_call_operand.vmem [shape: f32[2,4,1], index: 2, kind: output, shape index: {}]  }
   0x1   :  { %10 = vsyncpa [#allocation5 + $0x1], 0  ;;  %s494_s9 = smov 0   ;;  %s496_s10 = smov 0  }
   0x2   :  { %s498_s11 = smov 0   ;;  %s500_s12 = smov 0  }
   0x3   :  { %s502_s13 = smov 0   ;;  %s504_s14 = smov 0  }
   0x4 LB: > { %s322_s0 = sadd.s32 4294967295, %s475_s14   ;;  %s35_s15 = sadd.s32 1, %s471_s13  ;;  %s475_s14 = sphi %s504_s14, %s16_s14   ;;  %s471_s13 = sphi %s502_s13, %s634_s13   ;;  %s467_s12 = sphi %s500_s12, %s633_s12   ;;  %s463_s11 = sphi %s498_s11, %s632_s11   ;;  %s459_s10 = sphi %s496_s10, %s631_s10   ;;  %s455_s9 = sphi %s494_s9, %s630_s9  }
   0x5   : > { %p37_p0 = scmp.ge.s32.totalorder %s35_s15, 2  ;;  %s67_s16 = sadd.s32 1, %s463_s11 }
   0x6   : > { %p74_p1 = scmp.ne.s32.totalorder %s463_s11, %s459_s10  ;;  %p75_p2 = scmp.eq.s32.totalorder %s475_s14, 0 }
   0x7   : > { %s636_s15 = smov (%p37_p0, %s35_s15), 0  ;;  %p80_p4 = scmp.ne.s32.totalorder %s459_s10, %s455_s9 }
   0x8   : > { %p530_p3 = por %p75_p2, %p74_p1  ;;  %s60_s18 = ssub.s32 %s471_s13, %s636_s15 }
   0x9   : > { %p81_p5 = scmp.eq.s32.totalorder %s322_s0, 0  ;;  %p65_p6 = scmp.eq.s32.totalorder %s60_s18, 0 }
   0xa   : > { %p341_p8 = scmp.lt.s32.totalorder %s475_s14, 2  ;;  %s135_s21 = sand.u32 1, %s463_s11  }
   0xb   : > { %p537_p7 = por %p81_p5, %p80_p4  ;;  %s334_s22 = sshll.u32 %s471_s13, 7 }
   0xc   : > { %s543_s20 = scalar_select %p65_p6, %s463_s11, %s67_s16  }
   0xd   : > { %s326_s23 = sshll.u32 %s135_s21, 3  ;;  %s550_s26 = scalar_lea.hbm %s623_s1, %s334_s22 }
   0xe   : > { %s139_s27 = scalar_lea.vmem [#allocation4], %s326_s23  ;;  %p554_p9 = pnand %p341_p8, %p530_p3 }
   0xf   : > { %s151_s28 = sshll.u32 %s139_s27, 4  ;;  %s136_s30 = scalar_lea.sflag [#allocation5], %s135_s21  ;;  %s558_s28 = int_to_ptr.vmem [resolvable:$true] %s151_s28 }
  0x10   : > { %s395_s3 = scalar_lea.hbm %s550_s26, 128  ;;  %p397_p13 = pneg %p554_p9 }
  0x11   : > { %p396_p12 = scmp.ne.s32.totalorder %s550_s26, %s395_s3  ;;  %s400_s6 = scalar_lea.hbm %s623_s1, 256 }
  0x12   : > { %p401_p2 = scmp.lt.u32.totalorder %s550_s26, %s623_s1  ;;  %p402_p3 = scmp.lt.u32.totalorder %s400_s6, %s395_s3 }
  0x13   : > { %p398_p0 = pnand %p397_p13, %p396_p12  ;;  %p404_p5 = scmp.lt.u32.totalorder %s395_s3, %s550_s26 }
  0x14   : > { %p403_p4 = por %p402_p3, %p401_p2 }
  0x15   : > { %p399_p1 = pneg %p398_p0 }
  0x16   : > { %p405_p6 = por %p404_p5, %p403_p4 }
  0x18   : > { %p406_p8 = pnand %p405_p6, %p399_p1 }
  0x1a   : > { %409 = shalt.err (!%p406_p8)
}
  0x1b   : > { %s410_s9 = scalar_lea.vmem %s558_s28, 128  ;;  %s477_s0 = smov [#allocation4]  }
  0x1c   : > { %p411_p12 = scmp.ne.s32.totalorder %s558_s28, %s410_s9  ;;  %s415_s16 = sshll.u32 %s477_s0, 4  ;;  %s416_s16 = int_to_ptr.vmem [resolvable:$false] %s415_s16 }
  0x1d   : > { %s417_s17 = scalar_lea.vmem %s416_s16, 256  ;;  %p418_p11 = scmp.lt.s32.totalorder %s558_s28, %s416_s16 }
  0x1e   : > { %p413_p0 = pnand %p411_p12, %p397_p13  ;;  %p419_p2 = scmp.lt.s32.totalorder %s417_s17, %s410_s9 }
  0x20   : > { %p414_p10 = pneg %p413_p0  ;;  %p420_p3 = por %p419_p2, %p418_p11 }
  0x22   : > { %p421_p4 = pnand %p420_p3, %p414_p10 }
  0x24   : > { %424 = shalt.err (!%p421_p4)
}
  0x25   : > { %340 = dma.hbm_to_vmem [thread:$0]  (!%p554_p9), %s550_s26, 128, %s558_s28, %s136_s30  }
  0x26   : > { %p628_p1 = scmp.lt.s32.totalorder %s475_s14, 3  ;;  %p629_p5 = scmp.ge.s32.totalorder %s475_s14, 1 }
  0x28   : > { %p157_p13 = pnand %p629_p5, %p628_p1 }
  0x29   : > { %s162_s18 = sand.u32 (!%p157_p13), 1, %s459_s10  }
  0x2a   : > { %160 = sbr.rel (%p157_p13) target bundleno = 245 (0xf5), region = 28  ;;  %s330_s21 = sshll.u32 (!%p157_p13), %s162_s18, 3 }
  0x2b   : > { %s163_s22 = scalar_lea.sflag (!%p157_p13), [#allocation5], %s162_s18  ;;  %s166_s23 = scalar_lea.vmem (!%p157_p13), [#allocation4], %s330_s21 }
  0x31   : > { %450 = dma.done.wait (%p537_p7), %s163_s22, 128  }
  0x32   : > { %452 = vsyncadd (%p537_p7), %s163_s22, 4294967168  ;;  %vm201_vm0 = vcmask 3072   ;;  %v478_v0 = vmov 0.0   ;;  %v203_v1 = vld [vmem:[%s166_s23] sm:$0xff]  ;;  %vm211_vm1 = vcmask 1043456   ;;  %p190_p7 = scmp.lt.s32.totalorder %s467_s12, 1 }
  0x33   : > { %202 = vst.msk [vmem:[#allocation2] sm:$0xf] %vm201_vm0, %v478_v0  ;;  %v204_v2 = vmax.f32 %v203_v1, 1e-06 }
  0x34   : > { %s638_s12 = smov (!%p190_p7, %s467_s12), 1 }
  0x35   : > { %v205_v3 = vmul.f32 %v204_v2, %v204_v2  ;;  %s331_s19 = sshll.u32 %s638_s12, 2 }
  0x36   : > { %s196_s26 = scalar_lea.vmem %s624_s2, %s331_s19 }
  0x37   : > { %v206_v4 = vmul.f32 %v205_v3, %v204_v2 }
  0x39   : > { %v209_v5 = vcombine.high %v206_v4, %v206_v4  ;;  %v212_v6 = vsel %vm211_vm1, %v206_v4, 0.0 }
  0x3a   : > { %v207_v9 = vld [vmem:[#allocation2] sm:$0xf] }
  0x3b   : > { %v213_v7 = vsel %vm211_vm1, %v209_v5, 0.0 }
  0x3c   : > { %v214_v8 = vadd.f32 %v213_v7, %v212_v6 }
  0x3e   : > { %215 = vadd.xlane.f32.xlu0 %v214_v8 }
  0xcb   : > { %v216_v10 = vpop.xlane.xlu0 %215 }
  0xcc   : > { %v217_v11 = vadd.f32 %v216_v10, %v207_v9 }
  0xce   : > { %219 = vst.msk [vmem:[#allocation2] sm:$0xf] %vm201_vm0, %v217_v11 }
  0xd5   : > { %v223_v12 = vld [vmem:[#allocation2] sm:$0xf] }
  0xd6   : > { %v224_v13 = vmul.f32 0.00390625, %v223_v12 }
  0xd8   : > { %391 = vlog2.f32 %v224_v13 }
  0xe2   : > { %v392_v14 = vpop.eup %391 }
  0xe3   : > { %v226_v15 = vmul.f32 0.6931472, %v392_v14 }
  0xe5   : > { %v227_v16 = vmul.f32 0.33333334, %v226_v15 }
  0xe7   : > { %v228_v17 = vmul.f32 1.442695, %v227_v16 }
  0xe9   : > { %393 = vpow2.f32 %v228_v17 }
  0xf3   : > { %v394_v18 = vpop.eup %393 }
  0xf4   : > { %230 = vst.msk [vmem:[%s196_s26] sm:$0xf] %vm201_vm0, %v394_v18 }
  0xf5 PF: > { %s16_s14 = sadd.s32 1, %s475_s14   ;;  %s630_s9 = smov %s459_s10 }
  0xf6   : > { %p13_p9 = scmp.ge.s32.totalorder %s16_s14, 4   ;;  %s631_s10 = smov %s463_s11 }
  0xf7   : > { %s632_s11 = smov %s543_s20  ;;  %s633_s12 = smov %s471_s13 }
  0xf8   : > { %s634_s13 = smov %s636_s15  ;;  %15 = sbr.rel (!%p13_p9) target bundleno = 4 (0x4), region = 76 }
  0xff   :  { %256 = vsyncpa [#allocation5], 1 }
 0x100   :  { %258 = vsyncpa [#allocation5 + $0x1], 1 }

</bundles_post_ra>
